<compile_context>
chip_gen: v7x
topology: tpu7x:2x2x1
jax: 0.10.0
libtpu: 0.0.40
codegen_flags: <defaults>
</compile_context>

<pallas_src>
import functools

import jax
import jax.numpy as jnp
from jax import lax
from jax.experimental import pallas as pl
from jax.experimental.pallas import tpu as pltpu


def _round_up(v, m):
    return (v + m - 1) // m * m


def _concept_prefix_kernel(x_ref, wlin_ref, wcls_ref, bcls_ref, kbias_ref,
                           c_ref, out_ref, *, direct_3d):
    TB, N, D = x_ref.shape
    Kp = wlin_ref.shape[0]

    x = x_ref[...]                                            # (TB, N, D) bf16
    w_lin = wlin_ref[...]                                     # (Kp, D)    bf16

    # qk[b, n, k] = sum_d x[b, n, d] * w_lin[k, d]  (bf16 MXU, f32 accumulate).
    if direct_3d:
        # Direct 'bnd,kd->bnk' contraction: avoids collapsing (TB, N) into one
        # sublane axis (a relayout copy whenever N % 8 != 0, e.g. BLIP N=577).
        qk = lax.dot_general(x, w_lin, (((2,), (1,)), ((), ())),
                             preferred_element_type=jnp.float32)
    else:
        qk = lax.dot_general(x.reshape(TB * N, D), w_lin,
                             (((1,), (1,)), ((), ())),
                             preferred_element_type=jnp.float32)
        qk = qk.reshape(TB, N, Kp)

    # Additive lane-padding mask: 0 for valid concept lanes, -1e30 for padding.
    # One VPU add per step instead of iota + compare + select.
    qk = qk + kbias_ref[...].reshape(1, 1, Kp)

    # Softmax over the concept axis.
    m = jnp.max(qk, axis=-1, keepdims=True)
    e = jnp.exp(qk - m)
    denom = jnp.sum(e, axis=-1, keepdims=True)
    score = e * pl.reciprocal(denom, approx=True)             # (TB, N, Kp)

    # Mean over tokens.
    inv_n = 1.0 / N
    c_mean = jnp.sum(score, axis=1) * inv_n                   # (TB, Kp) f32

    # h = c @ W_lin : contract Kp against the rows of W_lin (no transpose).
    h = lax.dot_general(c_mean.astype(jnp.bfloat16), w_lin,
                        (((1,), (0,)), ((), ())),
                        preferred_element_type=jnp.float32)   # (TB, D)

    # logits = h @ W_cls^T + b : contract D with D (no transpose).
    logits = lax.dot_general(h.astype(jnp.bfloat16), wcls_ref[...],
                             (((1,), (1,)), ((), ())),
                             preferred_element_type=jnp.float32)
    logits = logits + bcls_ref[...]                           # (TB, Cp)

    c_ref[...] = c_mean
    out_ref[...] = logits


def _tpu_vmem_capacity_bytes():
    try:
        return int(pltpu.get_tpu_info().vmem_capacity_bytes)
    except Exception:
        return 64 * 1024 * 1024          # conservative (v7x per-TC size)


def _pick_block_b(B, N, D, Kp, Cp, vmem_cap):
    """Largest batch tile (multiple of 8) whose working set fits a
    generation-dependent VMEM budget, preferring exact divisors of B."""
    # Per-batch-row bytes: double-buffered bf16 x slab + f32 softmax
    # intermediates (qk / exp / score) + double-buffered f32 output rows.
    bytes_per_row = 2 * N * D * 2 + 3 * N * Kp * 4 + 2 * (Kp + Cp) * 4
    # Resident weights (bf16) + biases/mask (f32), single-buffered.
    weight_bytes = (Kp + Cp) * D * 2 + (Kp + Cp) * 4

    if vmem_cap <= 64 * 1024 * 1024:          # v7x-class core: 64 MiB VMEM
        work_budget = 40 * 1024 * 1024
        vmem_limit_cap = 56 * 1024 * 1024
    else:                                     # v5e / v6e: 128 MiB VMEM
        work_budget = 80 * 1024 * 1024
        vmem_limit_cap = 112 * 1024 * 1024

    cap = (work_budget - weight_bytes) // max(bytes_per_row, 1)
    cap = max(8, (cap // 8) * 8)              # 8 = hardware sublane floor

    # Keep >= 2 grid steps when possible so the "parallel" batch axis can be
    # split across the two v7x TensorCores (no-op on single-TC parts).
    if B > 8:
        cap = min(cap, max(8, _round_up(-(-B // 2), 8)))

    # Prefer a tile that divides B exactly -> no host-side pad/copy of x.
    block_b = 0
    d = 8
    while d <= min(cap, B):
        if B % d == 0:
            block_b = d
        d += 8
    if block_b == 0:
        block_b = min(cap, _round_up(B, 8))

    return block_b, bytes_per_row, weight_bytes, vmem_limit_cap


def blip_concept_prefix_forward(x, w_lin, w_cls, b_cls, return_concept=False,
                                block_b=None):
    """x: (B, N_TOKENS, emb_dim) BLIP vision features, w_lin: (K, emb_dim),
    w_cls: (C, emb_dim), b_cls: (C,). PyTorch (out_features, in_features)
    weight layout."""
    B, N, D = x.shape
    K = w_lin.shape[0]
    C = w_cls.shape[0]

    # Lane-pad concept / class dims to 128 -> full vregs, unmasked stores.
    Kp = _round_up(K, 128)
    Cp = _round_up(C, 128)

    # bf16 MXU inputs (f32 accumulation in-kernel).
    w_lin_p = jnp.pad(w_lin, ((0, Kp - K), (0, 0))).astype(jnp.bfloat16)
    w_cls_p = jnp.pad(w_cls, ((0, Cp - C), (0, 0))).astype(jnp.bfloat16)
    b_cls_p = jnp.pad(b_cls.astype(jnp.float32), (0, Cp - C)).reshape(1, Cp)
    k_bias = jnp.where(jnp.arange(Kp) < K, 0.0, -1e30).astype(
        jnp.float32).reshape(1, Kp)

    vmem_cap = _tpu_vmem_capacity_bytes()
    auto_b, bytes_per_row, weight_bytes, vmem_limit_cap = _pick_block_b(
        B, N, D, Kp, Cp, vmem_cap)
    if block_b is None:
        block_b = auto_b

    Bp = _round_up(B, block_b)
    # x is the dominant HBM stream: ship it as bf16. Pad only when needed.
    x_in = x if x.dtype == jnp.bfloat16 else x.astype(jnp.bfloat16)
    if Bp != B:
        x_in = jnp.pad(x_in, ((0, Bp - B), (0, 0), (0, 0)))

    grid = (Bp // block_b,)

    est_vmem = block_b * bytes_per_row + 2 * weight_bytes
    vmem_limit = int(min(max(int(1.25 * est_vmem), 32 * 1024 * 1024),
                         vmem_limit_cap))

    cost = pl.CostEstimate(
        flops=2 * Bp * N * D * Kp + 2 * Bp * Kp * D + 2 * Bp * D * Cp,
        transcendentals=Bp * N * Kp,
        bytes_accessed=(2 * Bp * N * D + 2 * (Kp + Cp) * D + 4 * (Kp + Cp)
                        + 4 * Bp * (Kp + Cp)),
    )

    out_shape = (
        jax.ShapeDtypeStruct((Bp, Kp), jnp.float32),
        jax.ShapeDtypeStruct((Bp, Cp), jnp.float32),
    )

    def build(direct_3d, single_buffer_weights):
        kernel = functools.partial(_concept_prefix_kernel, direct_3d=direct_3d)

        def wspec(shape):
            idx = lambda i: (0,) * len(shape)
            if single_buffer_weights:
                # Constant index map -> weights never change across the grid;
                # don't waste VMEM double-buffering them.
                return pl.BlockSpec(shape, idx, pipeline_mode=pl.Buffered(1))
            return pl.BlockSpec(shape, idx)

        return pl.pallas_call(
            kernel,
            out_shape=out_shape,
            grid=grid,
            in_specs=[
                pl.BlockSpec((block_b, N, D), lambda i: (i, 0, 0)),  # pipelined
                wspec((Kp, D)),
                wspec((Cp, D)),
                wspec((1, Cp)),
                wspec((1, Kp)),
            ],
            out_specs=(
                pl.BlockSpec((block_b, Kp), lambda i: (i, 0)),
                pl.BlockSpec((block_b, Cp), lambda i: (i, 0)),
            ),
            compiler_params=pltpu.CompilerParams(
                dimension_semantics=("parallel",),
                vmem_limit_bytes=vmem_limit,
            ),
            cost_estimate=cost,
        )

    try:
        c_full, logits_full = build(True, True)(
            x_in, w_lin_p, w_cls_p, b_cls_p, k_bias)
    except Exception:
        # Conservative build: reshape-based 2D matmul + default double-buffered
        # weights (the lowering path proven in v1/v2).
        c_full, logits_full = build(False, False)(
            x_in, w_lin_p, w_cls_p, b_cls_p, k_bias)

    c = c_full[:B, :K]
    logits = logits_full[:B, :C]
    if return_concept:
        return c, logits
    return logits


def _reference(x, w_lin, w_cls, b_cls):
    B, N, D = x.shape
    qk = (x.reshape(-1, D) @ w_lin.T).reshape(B, N, -1)
    score = jax.nn.softmax(qk, axis=-1)
    c = score.mean(axis=1)
    h = c @ w_lin
    logits = h @ w_cls.T + b_cls
    return c, logits


if __name__ == "__main__":
    # Small, forward-consistent shapes.
    B = 2                    # batch
    N_TOKENS = 8             # vision tokens
    EMB_DIM = 32             # projector.config.vision_config.hidden_size (synthetic)
    NUM_CONCEPTS = 4
    TOKENS_PER_CONCEPT = 2
    NUM_CLASSES = 6
    K = NUM_CONCEPTS * TOKENS_PER_CONCEPT

    key = jax.random.PRNGKey(0)
    kx, kw1, kw2, kb = jax.random.split(key, 4)

    # Synthetic BLIP vision features + deterministically initialized params.
    x = jax.random.normal(kx, (B, N_TOKENS, EMB_DIM), dtype=jnp.float32)
    w_lin = 0.1 * jax.random.normal(kw1, (K, EMB_DIM), dtype=jnp.float32)            # nn.Linear(emb_dim, K, bias=False)
    w_cls = 0.1 * jax.random.normal(kw2, (NUM_CLASSES, EMB_DIM), dtype=jnp.float32)  # nn.Linear(emb_dim, num_classes)
    b_cls = 0.01 * jax.random.normal(kb, (NUM_CLASSES,), dtype=jnp.float32)

    c, logits = blip_concept_prefix_forward(x, w_lin, w_cls, b_cls,
                                            return_concept=True)
    jax.block_until_ready((c, logits))

    c_ref, logits_ref = _reference(x, w_lin, w_cls, b_cls)
    # Tolerance covers bf16 MXU inputs and the approx-EUP softmax reciprocal.
    assert jnp.allclose(c, c_ref, atol=3e-3, rtol=3e-3), "concept mismatch"
    assert jnp.allclose(logits, logits_ref, atol=3e-3, rtol=3e-3), "logits mismatch"

    print("KERNEL_OK")
</pallas_src>

<mosaic_0001>
module attributes {stable_mosaic.version = 11 : i64} {
  func.func @_concept_prefix_kernel(%arg0: i32, %arg1: memref<8x8x32xbf16, #tpu.memory_space<vmem>>, %arg2: memref<128x32xbf16, #tpu.memory_space<vmem>>, %arg3: memref<128x32xbf16, #tpu.memory_space<vmem>>, %arg4: memref<1x128xf32, #tpu.memory_space<vmem>>, %arg5: memref<1x128xf32, #tpu.memory_space<vmem>>, %arg6: memref<8x128xf32, #tpu.memory_space<vmem>>, %arg7: memref<8x128xf32, #tpu.memory_space<vmem>>) attributes {dimension_semantics = [#tpu.dimension_semantics<parallel>], iteration_bounds = array<i64: 1>, scalar_prefetch = 0 : i64, scratch_operands = 0 : i64, tpu.core_type = #tpu.core_type<tc>, window_params = [{transform_indices = @transform_0, window_bounds = array<i64: 8, 8, 32>}, {pipeline_mode = #tpu.pipeline_mode<synchronous>, transform_indices = @transform_1, window_bounds = array<i64: 128, 32>}, {pipeline_mode = #tpu.pipeline_mode<synchronous>, transform_indices = @transform_2, window_bounds = array<i64: 128, 32>}, {pipeline_mode = #tpu.pipeline_mode<synchronous>, transform_indices = @transform_3, window_bounds = array<i64: 1, 128>}, {pipeline_mode = #tpu.pipeline_mode<synchronous>, transform_indices = @transform_4, window_bounds = array<i64: 1, 128>}, {transform_indices = @transform_5, window_bounds = array<i64: 8, 128>}, {transform_indices = @transform_6, window_bounds = array<i64: 8, 128>}]} {
    %c0 = arith.constant 0 : index
    %c0_0 = arith.constant 0 : index
    %c0_1 = arith.constant 0 : index
    %0 = vector.load %arg1[%c0, %c0_0, %c0_1] : memref<8x8x32xbf16, #tpu.memory_space<vmem>>, vector<8x8x32xbf16>
    %c0_2 = arith.constant 0 : index
    %c0_3 = arith.constant 0 : index
    %1 = vector.load %arg2[%c0_2, %c0_3] : memref<128x32xbf16, #tpu.memory_space<vmem>>, vector<128x32xbf16>
    %cst = arith.constant dense<0.000000e+00> : vector<8x8x128xf32>
    %2 = tpu.matmul %0, %1, %cst {dimension_numbers = #tpu.dot_dimension_numbers<[2], [1], [0, 1], [0], [0, 0, 0, 1, 1, 0], [], []>} : vector<8x8x32xbf16>, vector<128x32xbf16>, vector<8x8x128xf32> -> vector<8x8x128xf32>
    %c0_4 = arith.constant 0 : index
    %c0_5 = arith.constant 0 : index
    %3 = vector.load %arg5[%c0_4, %c0_5] : memref<1x128xf32, #tpu.memory_space<vmem>>, vector<1x128xf32>
    %4 = vector.shape_cast %3 : vector<1x128xf32> to vector<1x1x128xf32>
    %5 = vector.broadcast %4 : vector<1x1x128xf32> to vector<8x8x128xf32>
    %6 = arith.addf %2, %5 : vector<8x8x128xf32>
    %cst_6 = arith.constant dense<0xFF800000> : vector<8x8xf32>
    %7 = vector.multi_reduction <maximumf>, %6, %cst_6 [2] : vector<8x8x128xf32> to vector<8x8xf32>
    %8 = vector.shape_cast %7 : vector<8x8xf32> to vector<8x8x1xf32>
    %9 = vector.broadcast %8 : vector<8x8x1xf32> to vector<8x8x128xf32>
    %10 = arith.subf %6, %9 : vector<8x8x128xf32>
    %11 = math.exp %10 : vector<8x8x128xf32>
    %cst_7 = arith.constant dense<0.000000e+00> : vector<8x8xf32>
    %12 = vector.multi_reduction <add>, %11, %cst_7 [2] : vector<8x8x128xf32> to vector<8x8xf32>
    %13 = vector.shape_cast %12 : vector<8x8xf32> to vector<8x8x1xf32>
    %14 = tpu.reciprocal %13 {approx = true} : vector<8x8x1xf32> -> vector<8x8x1xf32>
    %15 = vector.broadcast %14 : vector<8x8x1xf32> to vector<8x8x128xf32>
    %16 = arith.mulf %11, %15 : vector<8x8x128xf32>
    %cst_8 = arith.constant dense<0.000000e+00> : vector<8x128xf32>
    %17 = vector.multi_reduction <add>, %16, %cst_8 [1] : vector<8x8x128xf32> to vector<8x128xf32>
    %cst_9 = arith.constant 1.250000e-01 : f32
    %18 = vector.broadcast %cst_9 : f32 to vector<8x128xf32>
    %19 = arith.mulf %17, %18 : vector<8x128xf32>
    %20 = arith.truncf %19 : vector<8x128xf32> to vector<8x128xbf16>
    %cst_10 = arith.constant dense<0.000000e+00> : vector<8x32xf32>
    %21 = tpu.matmul %20, %1, %cst_10 {dimension_numbers = #tpu.dot_dimension_numbers<[1], [0], [0], [1], [0, 0, 1, 1], [], []>} : vector<8x128xbf16>, vector<128x32xbf16>, vector<8x32xf32> -> vector<8x32xf32>
    %22 = arith.truncf %21 : vector<8x32xf32> to vector<8x32xbf16>
    %c0_11 = arith.constant 0 : index
    %c0_12 = arith.constant 0 : index
    %23 = vector.load %arg3[%c0_11, %c0_12] : memref<128x32xbf16, #tpu.memory_space<vmem>>, vector<128x32xbf16>
    %cst_13 = arith.constant dense<0.000000e+00> : vector<8x128xf32>
    %24 = tpu.matmul %22, %23, %cst_13 {dimension_numbers = #tpu.dot_dimension_numbers<[1], [1], [0], [0], [0, 0, 1, 0], [], []>} : vector<8x32xbf16>, vector<128x32xbf16>, vector<8x128xf32> -> vector<8x128xf32>
    %c0_14 = arith.constant 0 : index
    %c0_15 = arith.constant 0 : index
    %25 = vector.load %arg4[%c0_14, %c0_15] : memref<1x128xf32, #tpu.memory_space<vmem>>, vector<1x128xf32>
    %26 = vector.broadcast %25 : vector<1x128xf32> to vector<8x128xf32>
    %27 = arith.addf %24, %26 : vector<8x128xf32>
    %c0_16 = arith.constant 0 : index
    %c0_17 = arith.constant 0 : index
    %28 = vector.load %arg6[%c0_16, %c0_17] : memref<8x128xf32, #tpu.memory_space<vmem>>, vector<8x128xf32>
    tpu.vector_store %arg6[%c0_16, %c0_17], %19 {strides = array<i32>} : memref<8x128xf32, #tpu.memory_space<vmem>>, vector<8x128xf32>,
    %c0_18 = arith.constant 0 : index
    %c0_19 = arith.constant 0 : index
    %29 = vector.load %arg7[%c0_18, %c0_19] : memref<8x128xf32, #tpu.memory_space<vmem>>, vector<8x128xf32>
    tpu.vector_store %arg7[%c0_18, %c0_19], %27 {strides = array<i32>} : memref<8x128xf32, #tpu.memory_space<vmem>>, vector<8x128xf32>,
    return
  }
  func.func @transform_0(%arg0: i32) -> (i32, i32, i32) {
    %c0_i32 = arith.constant 0 : i32
    %c0_i32_0 = arith.constant 0 : i32
    %c0_i32_1 = arith.constant 0 : i32
    return %arg0, %c0_i32, %c0_i32_0 : i32, i32, i32
  }
  func.func @transform_1(%arg0: i32) -> (i32, i32) {
    %c0_i32 = arith.constant 0 : i32
    %c0_i32_0 = arith.constant 0 : i32
    %c0_i32_1 = arith.constant 0 : i32
    return %c0_i32, %c0_i32_0 : i32, i32
  }
  func.func @transform_2(%arg0: i32) -> (i32, i32) {
    %c0_i32 = arith.constant 0 : i32
    %c0_i32_0 = arith.constant 0 : i32
    %c0_i32_1 = arith.constant 0 : i32
    return %c0_i32, %c0_i32_0 : i32, i32
  }
  func.func @transform_3(%arg0: i32) -> (i32, i32) {
    %c0_i32 = arith.constant 0 : i32
    %c0_i32_0 = arith.constant 0 : i32
    %c0_i32_1 = arith.constant 0 : i32
    return %c0_i32, %c0_i32_0 : i32, i32
  }
  func.func @transform_4(%arg0: i32) -> (i32, i32) {
    %c0_i32 = arith.constant 0 : i32
    %c0_i32_0 = arith.constant 0 : i32
    %c0_i32_1 = arith.constant 0 : i32
    return %c0_i32, %c0_i32_0 : i32, i32
  }
  func.func @transform_5(%arg0: i32) -> (i32, i32) {
    %c0_i32 = arith.constant 0 : i32
    %c0_i32_0 = arith.constant 0 : i32
    return %arg0, %c0_i32 : i32, i32
  }
  func.func @transform_6(%arg0: i32) -> (i32, i32) {
    %c0_i32 = arith.constant 0 : i32
    %c0_i32_0 = arith.constant 0 : i32
    return %arg0, %c0_i32 : i32, i32
  }
}

module attributes {stable_mosaic.version = 11 : i64} {
  func.func @_concept_prefix_kernel(%arg0: i32, %arg1: memref<8x8x32xbf16, #tpu.memory_space<vmem>>, %arg2: memref<128x32xbf16, #tpu.memory_space<vmem>>, %arg3: memref<128x32xbf16, #tpu.memory_space<vmem>>, %arg4: memref<1x128xf32, #tpu.memory_space<vmem>>, %arg5: memref<1x128xf32, #tpu.memory_space<vmem>>, %arg6: memref<8x128xf32, #tpu.memory_space<vmem>>, %arg7: memref<8x128xf32, #tpu.memory_space<vmem>>) attributes {dimension_semantics = [#tpu.dimension_semantics<parallel>], iteration_bounds = array<i64: 1>, scalar_prefetch = 0 : i64, scratch_operands = 0 : i64, tpu.core_type = #tpu.core_type<tc>, window_params = [{transform_indices = @transform_0, window_bounds = array<i64: 8, 8, 32>}, {pipeline_mode = #tpu.pipeline_mode<synchronous>, transform_indices = @transform_1, window_bounds = array<i64: 128, 32>}, {pipeline_mode = #tpu.pipeline_mode<synchronous>, transform_indices = @transform_2, window_bounds = array<i64: 128, 32>}, {pipeline_mode = #tpu.pipeline_mode<synchronous>, transform_indices = @transform_3, window_bounds = array<i64: 1, 128>}, {pipeline_mode = #tpu.pipeline_mode<synchronous>, transform_indices = @transform_4, window_bounds = array<i64: 1, 128>}, {transform_indices = @transform_5, window_bounds = array<i64: 8, 128>}, {transform_indices = @transform_6, window_bounds = array<i64: 8, 128>}]} {
    %c0 = arith.constant 0 : index
    %c0_0 = arith.constant 0 : index
    %c0_1 = arith.constant 0 : index
    %0 = vector.load %arg1[%c0, %c0_0, %c0_1] : memref<8x8x32xbf16, #tpu.memory_space<vmem>>, vector<8x8x32xbf16>
    %c0_2 = arith.constant 0 : index
    %c0_3 = arith.constant 0 : index
    %1 = vector.load %arg2[%c0_2, %c0_3] : memref<128x32xbf16, #tpu.memory_space<vmem>>, vector<128x32xbf16>
    %2 = vector.shape_cast %0 : vector<8x8x32xbf16> to vector<64x32xbf16>
    %cst = arith.constant dense<0.000000e+00> : vector<64x128xf32>
    %3 = tpu.matmul %2, %1, %cst {dimension_numbers = #tpu.dot_dimension_numbers<[1], [1], [0], [0], [0, 0, 1, 0], [], []>} : vector<64x32xbf16>, vector<128x32xbf16>, vector<64x128xf32> -> vector<64x128xf32>
    %4 = vector.shape_cast %3 : vector<64x128xf32> to vector<8x8x128xf32>
    %c0_4 = arith.constant 0 : index
    %c0_5 = arith.constant 0 : index
    %5 = vector.load %arg5[%c0_4, %c0_5] : memref<1x128xf32, #tpu.memory_space<vmem>>, vector<1x128xf32>
    %6 = vector.shape_cast %5 : vector<1x128xf32> to vector<1x1x128xf32>
    %7 = vector.broadcast %6 : vector<1x1x128xf32> to vector<8x8x128xf32>
    %8 = arith.addf %4, %7 : vector<8x8x128xf32>
    %cst_6 = arith.constant dense<0xFF800000> : vector<8x8xf32>
    %9 = vector.multi_reduction <maximumf>, %8, %cst_6 [2] : vector<8x8x128xf32> to vector<8x8xf32>
    %10 = vector.shape_cast %9 : vector<8x8xf32> to vector<8x8x1xf32>
    %11 = vector.broadcast %10 : vector<8x8x1xf32> to vector<8x8x128xf32>
    %12 = arith.subf %8, %11 : vector<8x8x128xf32>
    %13 = math.exp %12 : vector<8x8x128xf32>
    %cst_7 = arith.constant dense<0.000000e+00> : vector<8x8xf32>
    %14 = vector.multi_reduction <add>, %13, %cst_7 [2] : vector<8x8x128xf32> to vector<8x8xf32>
    %15 = vector.shape_cast %14 : vector<8x8xf32> to vector<8x8x1xf32>
    %16 = tpu.reciprocal %15 {approx = true} : vector<8x8x1xf32> -> vector<8x8x1xf32>
    %17 = vector.broadcast %16 : vector<8x8x1xf32> to vector<8x8x128xf32>
    %18 = arith.mulf %13, %17 : vector<8x8x128xf32>
    %cst_8 = arith.constant dense<0.000000e+00> : vector<8x128xf32>
    %19 = vector.multi_reduction <add>, %18, %cst_8 [1] : vector<8x8x128xf32> to vector<8x128xf32>
    %cst_9 = arith.constant 1.250000e-01 : f32
    %20 = vector.broadcast %cst_9 : f32 to vector<8x128xf32>
    %21 = arith.mulf %19, %20 : vector<8x128xf32>
    %22 = arith.truncf %21 : vector<8x128xf32> to vector<8x128xbf16>
    %cst_10 = arith.constant dense<0.000000e+00> : vector<8x32xf32>
    %23 = tpu.matmul %22, %1, %cst_10 {dimension_numbers = #tpu.dot_dimension_numbers<[1], [0], [0], [1], [0, 0, 1, 1], [], []>} : vector<8x128xbf16>, vector<128x32xbf16>, vector<8x32xf32> -> vector<8x32xf32>
    %24 = arith.truncf %23 : vector<8x32xf32> to vector<8x32xbf16>
    %c0_11 = arith.constant 0 : index
    %c0_12 = arith.constant 0 : index
    %25 = vector.load %arg3[%c0_11, %c0_12] : memref<128x32xbf16, #tpu.memory_space<vmem>>, vector<128x32xbf16>
    %cst_13 = arith.constant dense<0.000000e+00> : vector<8x128xf32>
    %26 = tpu.matmul %24, %25, %cst_13 {dimension_numbers = #tpu.dot_dimension_numbers<[1], [1], [0], [0], [0, 0, 1, 0], [], []>} : vector<8x32xbf16>, vector<128x32xbf16>, vector<8x128xf32> -> vector<8x128xf32>
    %c0_14 = arith.constant 0 : index
    %c0_15 = arith.constant 0 : index
    %27 = vector.load %arg4[%c0_14, %c0_15] : memref<1x128xf32, #tpu.memory_space<vmem>>, vector<1x128xf32>
    %28 = vector.broadcast %27 : vector<1x128xf32> to vector<8x128xf32>
    %29 = arith.addf %26, %28 : vector<8x128xf32>
    %c0_16 = arith.constant 0 : index
    %c0_17 = arith.constant 0 : index
    %30 = vector.load %arg6[%c0_16, %c0_17] : memref<8x128xf32, #tpu.memory_space<vmem>>, vector<8x128xf32>
    tpu.vector_store %arg6[%c0_16, %c0_17], %21 {strides = array<i32>} : memref<8x128xf32, #tpu.memory_space<vmem>>, vector<8x128xf32>,
    %c0_18 = arith.constant 0 : index
    %c0_19 = arith.constant 0 : index
    %31 = vector.load %arg7[%c0_18, %c0_19] : memref<8x128xf32, #tpu.memory_space<vmem>>, vector<8x128xf32>
    tpu.vector_store %arg7[%c0_18, %c0_19], %29 {strides = array<i32>} : memref<8x128xf32, #tpu.memory_space<vmem>>, vector<8x128xf32>,
    return
  }
  func.func @transform_0(%arg0: i32) -> (i32, i32, i32) {
    %c0_i32 = arith.constant 0 : i32
    %c0_i32_0 = arith.constant 0 : i32
    %c0_i32_1 = arith.constant 0 : i32
    return %arg0, %c0_i32, %c0_i32_0 : i32, i32, i32
  }
  func.func @transform_1(%arg0: i32) -> (i32, i32) {
    %c0_i32 = arith.constant 0 : i32
    %c0_i32_0 = arith.constant 0 : i32
    %c0_i32_1 = arith.constant 0 : i32
    return %c0_i32, %c0_i32_0 : i32, i32
  }
  func.func @transform_2(%arg0: i32) -> (i32, i32) {
    %c0_i32 = arith.constant 0 : i32
    %c0_i32_0 = arith.constant 0 : i32
    %c0_i32_1 = arith.constant 0 : i32
    return %c0_i32, %c0_i32_0 : i32, i32
  }
  func.func @transform_3(%arg0: i32) -> (i32, i32) {
    %c0_i32 = arith.constant 0 : i32
    %c0_i32_0 = arith.constant 0 : i32
    %c0_i32_1 = arith.constant 0 : i32
    return %c0_i32, %c0_i32_0 : i32, i32
  }
  func.func @transform_4(%arg0: i32) -> (i32, i32) {
    %c0_i32 = arith.constant 0 : i32
    %c0_i32_0 = arith.constant 0 : i32
    %c0_i32_1 = arith.constant 0 : i32
    return %c0_i32, %c0_i32_0 : i32, i32
  }
  func.func @transform_5(%arg0: i32) -> (i32, i32) {
    %c0_i32 = arith.constant 0 : i32
    %c0_i32_0 = arith.constant 0 : i32
    return %arg0, %c0_i32 : i32, i32
  }
  func.func @transform_6(%arg0: i32) -> (i32, i32) {
    %c0_i32 = arith.constant 0 : i32
    %c0_i32_0 = arith.constant 0 : i32
    return %arg0, %c0_i32 : i32, i32
  }
}

</mosaic_0001>

<bundles_post_ra>
// kernel: tpu_custom_call.1
= control target key start
LH: loop header
LB: loop body
LE: loop exit
PB: predicated region body
PF: predicated region fallthrough
CT: control target
= control target key end

     0   :  { %12 = vsyncpa [#allocation3], 0  ;;  %vm116_vm0 = vcmask 261120   ;;  %s1086_s0 = inlined_call_operand.vmem [shape: bf16[8,8,32], index: 0, kind: input, shape index: {}]   ;;  %s1087_s1 = inlined_call_operand.vmem [shape: bf16[128,32], index: 1, kind: input, shape index: {}]   ;;  %s1088_s2 = inlined_call_operand.vmem [shape: bf16[128,32], index: 2, kind: input, shape index: {}]   ;;  %s1089_s3 = inlined_call_operand.vmem [shape: f32[1,128], index: 3, kind: input, shape index: {}]   ;;  %s1090_s4 = inlined_call_operand.vmem [shape: f32[1,128], index: 4, kind: input, shape index: {}]   ;;  %s1091_s5 = inlined_call_operand.hbm [shape: f32[8,128], index: 5, kind: output, shape index: {0}]   ;;  %s1092_s6 = inlined_call_operand.hbm [shape: f32[8,128], index: 6, kind: output, shape index: {1}]  }
   0x1   :  { %v886_v0 = vld [vmem:[%s1087_s1] sm:$0xff]   ;;  %v891_v1 = vld [vmem:[%s1087_s1 + $0x8] sm:$0xff]   ;;  %v902_v3 = vld [vmem:[%s1087_s1 + $0x10] sm:$0xff]  }
   0x2   :  { %732 = vmatprep.subr.msk.bf16.mxu0 %vm116_vm0, %v886_v0  ;;  %v130_v2 = vsel %vm116_vm0, %v886_v0, 0  ;;  %v133_v4 = vsel %vm116_vm0, %v891_v1, 0  ;;  %v752_v5 = vld [vmem:[%s1086_s0] sm:$0xff]   ;;  %v136_v6 = vsel %vm116_vm0, %v902_v3, 0  ;;  %v917_v7 = vld [vmem:[%s1087_s1 + $0x18] sm:$0xff]  }
   0x3   :  { %669 = vmatpush3.bf16.xpose.msra.mxu0 %v130_v2  ;;  %684 = vmatprep.mubr.msk.bf16.mxu0 %vm116_vm0, %v752_v5 }
   0x4   :  { %733 = vmatprep.subr.msk.bf16.mxu0 %vm116_vm0, %v891_v1 }
   0xb   :  { %671 = vmatpush3.bf16.xpose.msra.mxu0 %v133_v4 }
   0xc   :  { %734 = vmatprep.subr.msk.bf16.mxu0 %vm116_vm0, %v902_v3 }
   0xd   :  { %13 = vsyncpa [#allocation5], 0  ;;  %v139_v8 = vsel %vm116_vm0, %v917_v7, 0  ;;  %v926_v9 = vld [vmem:[%s1087_s1 + $0x20] sm:$0xff]   ;;  %v935_v11 = vld [vmem:[%s1087_s1 + $0x28] sm:$0xff]   ;;  %vm845_vm1 = vmmov 0  }
   0xe   :  { %v142_v10 = vsel %vm116_vm0, %v926_v9, 0  ;;  %v145_v12 = vsel %vm116_vm0, %v935_v11, 0  ;;  %v944_v13 = vld [vmem:[%s1087_s1 + $0x30] sm:$0xff]   ;;  %v953_v15 = vld [vmem:[%s1087_s1 + $0x38] sm:$0xff]   ;;  %v753_v17 = vld [vmem:[%s1086_s0 + $0x8] sm:$0xff]   ;;  %vm370_vm2 = vcmask 1041409  }
   0xf   :  { %v148_v14 = vsel %vm116_vm0, %v944_v13, 0  ;;  %v151_v16 = vsel %vm116_vm0, %v953_v15, 0  ;;  %v754_v18 = vld [vmem:[%s1086_s0 + $0x10] sm:$0xff]   ;;  %v755_v19 = vld [vmem:[%s1086_s0 + $0x18] sm:$0xff]   ;;  %v611_v20 = vld [vmem:[%s1090_s4] ss:$0 sm:$0xff] }
  0x10   :  { %vm372_vm3 = vcmask 1042434   ;;  %vm374_vm4 = vcmask 1043459   ;;  %vm376_vm5 = vcmask 1044484   ;;  %vm378_vm6 = vcmask 1045509   ;;  %s846_s12 = smov [#allocation2]  }
  0x11   :  { %vm380_vm7 = vcmask 1046534   ;;  %vm382_vm8 = vcmask 1047559   ;;  %s589_s13 = sshll.u32 %s846_s12, 4  ;;  %s590_s13 = int_to_ptr.vmem [resolvable:$true] %s589_s13 }
  0x12   :  { %s796_s14 = scalar_lea.vmem %s590_s13, 128  ;;  %p801_p1 = scmp.lt.s32.totalorder %s590_s13, %s590_s13 }
  0x13   :  { %673 = vmatpush3.bf16.xpose.msra.mxu0 %v136_v6  ;;  %p797_p0 = scmp.ne.s32.totalorder %s590_s13, %s796_s14  ;;  %p802_p2 = scmp.lt.s32.totalorder %s796_s14, %s796_s14 }
  0x14   :  { %735 = vmatprep.subr.msk.bf16.mxu0 %vm116_vm0, %v917_v7 }
  0x15   :  { %p803_p3 = por %p802_p2, %p801_p1 }
  0x17   :  { %p804_p4 = pnand %p803_p3, %p797_p0 }
  0x1b   :  { %675 = vmatpush3.bf16.xpose.msra.mxu0 %v139_v8 }
  0x1c   :  { %736 = vmatprep.subr.msk.bf16.mxu0 %vm116_vm0, %v926_v9 }
  0x23   :  { %677 = vmatpush3.bf16.xpose.msra.mxu0 %v142_v10  ;;  %v844_v10 = vmov 0.0  }
  0x24   :  { %737 = vmatprep.subr.msk.bf16.mxu0 %vm116_vm0, %v935_v11  ;;  %692 = vmatprep.subr.bf16.mxu1 %v844_v10 }
  0x25   :  { %693 = vmatpush3.bf16.msra.mxu1 %v886_v0  ;;  %708 = vmatprep.mubr.msk.bf16.mxu1 %vm845_vm1, %v844_v10 }
  0x26   :  { %694 = vmatprep.subr.bf16.mxu1 %v844_v10 }
  0x29   :  { %695 = vmatpush3.bf16.msra.mxu1 %v891_v1 }
  0x2a   :  { %696 = vmatprep.subr.bf16.mxu1 %v844_v10 }
  0x2b   :  { %679 = vmatpush3.bf16.xpose.msra.mxu0 %v145_v12 }
  0x2c   :  { %738 = vmatprep.subr.msk.bf16.mxu0 %vm116_vm0, %v944_v13 }
  0x2d   :  { %697 = vmatpush3.bf16.msra.mxu1 %v902_v3 }
  0x2e   :  { %698 = vmatprep.subr.bf16.mxu1 %v844_v10 }
  0x31   :  { %699 = vmatpush3.bf16.msra.mxu1 %v917_v7 }
  0x32   :  { %700 = vmatprep.subr.bf16.mxu1 %v844_v10 }
  0x33   :  { %681 = vmatpush3.bf16.xpose.msra.mxu0 %v148_v14 }
  0x34   :  { %739 = vmatprep.subr.msk.bf16.mxu0 %vm116_vm0, %v953_v15 }
  0x35   :  { %701 = vmatpush3.bf16.msra.mxu1 %v926_v9 }
  0x36   :  { %702 = vmatprep.subr.bf16.mxu1 %v844_v10 }
  0x39   :  { %703 = vmatpush3.bf16.msra.mxu1 %v935_v11 }
  0x3a   :  { %704 = vmatprep.subr.bf16.mxu1 %v844_v10 }
  0x3b   :  { %683 = vmatpush3.bf16.xpose.msra.mxu0 %v151_v16 }
  0x3d   :  { %705 = vmatpush3.bf16.msra.mxu1 %v944_v13 }
  0x3e   :  { %706 = vmatprep.subr.bf16.mxu1 %v844_v10 }
  0x41   :  { %707 = vmatpush3.bf16.msra.mxu1 %v953_v15 }
  0x42   :  { %685 = vmatmul.mubr.msk.bf16.vlgmr.msra.gmra.mrb[0].mxu0 %vm116_vm0, %v753_v17  ;;  %712 = vmatprep.subr.bf16.mxu1 %v844_v10 }
  0x43   :  { %688 = vmatprep.mubr.msk.bf16.mxu0 %vm116_vm0, %v754_v18 }
  0x4a   :  { %689 = vmatmul.mubr.msk.bf16.gmra.mrb[4].mxu0 %vm116_vm0, %v755_v19 }
 0x115   :  { %v686_v21 = vpop.f32.mrb[0].mxu0 }
 0x116   :  { %v196_v22 = vadd.f32 %v686_v21, %v611_v20  ;;  %v187_v23 = vpop.f32.mrb[1].mxu0 }
 0x117   :  { %v188_v24 = vadd.f32 %v611_v20, %v187_v23  ;;  %v687_v25 = vpop.f32.mrb[2].mxu0 }
 0x118   :  { %222 = vmax.xlane.f32.xlu1 %v196_v22  ;;  %v190_v26 = vpop.f32.mrb[3].mxu0  ;;  %v199_v27 = vadd.f32 %v687_v25, %v611_v20 }
 0x119   :  { %218 = vmax.xlane.f32.xlu0 %v188_v24  ;;  %v191_v28 = vadd.f32 %v611_v20, %v190_v26 }
 0x11c   :  { %224 = vmax.xlane.f32.xlu1 %v199_v27 }
 0x11d   :  { %v690_v29 = vpop.f32.mrb[4].mxu0  ;;  %220 = vmax.xlane.f32.xlu0 %v191_v28 }
 0x11e   :  { %v203_v30 = vpop.f32.mrb[5].mxu0  ;;  %v212_v35 = vadd.f32 %v690_v29, %v611_v20 }
 0x11f   :  { %v204_v31 = vadd.f32 %v611_v20, %v203_v30  ;;  %v691_v32 = vpop.f32.mrb[6].mxu0 }
 0x120   :  { %v206_v33 = vpop.f32.mrb[7].mxu0  ;;  %v215_v36 = vadd.f32 %v691_v32, %v611_v20 }
 0x121   :  { %v207_v34 = vadd.f32 %v611_v20, %v206_v33  ;;  %226 = vmax.xlane.f32.xlu0 %v204_v31 }
 0x123   :  { %228 = vmax.xlane.f32.xlu1 %v207_v34 }
 0x125   :  { %230 = vmax.xlane.f32.xlu0 %v212_v35 }
 0x127   :  { %232 = vmax.xlane.f32.xlu1 %v215_v36 }
 0x1a5   :  { %v223_v37 = vpop.xlane.xlu1 %222 }
 0x1a6   :  { %v236_v38 = vsub.f32 %v196_v22, %v223_v37  ;;  %v219_v39 = vpop.xlane.xlu0 %218 }
 0x1a7   :  { %v234_v40 = vsub.f32 %v188_v24, %v219_v39 }
 0x1a8   :  { %v246_v41 = vmul.f32 1.442695, %v236_v38 }
 0x1a9   :  { %v242_v42 = vmul.f32 1.442695, %v234_v40  ;;  %v225_v43 = vpop.xlane.xlu1 %224 }
 0x1aa   :  { %764 = vpow2.f32 %v246_v41  ;;  %v237_v44 = vsub.f32 %v199_v27, %v225_v43  ;;  %v221_v45 = vpop.xlane.xlu0 %220 }
 0x1ab   :  { %v235_v46 = vsub.f32 %v191_v28, %v221_v45  ;;  %766 = vpow2.f32 %v242_v42 }
 0x1ac   :  { %v248_v47 = vmul.f32 1.442695, %v237_v44 }
 0x1ad   :  { %v244_v48 = vmul.f32 1.442695, %v235_v46 }
 0x1ae   :  { %768 = vpow2.f32 %v248_v47  ;;  %v227_v49 = vpop.xlane.xlu0 %226 }
 0x1af   :  { %v238_v50 = vsub.f32 %v204_v31, %v227_v49  ;;  %770 = vpow2.f32 %v244_v48 }
 0x1b0   :  { %v229_v51 = vpop.xlane.xlu1 %228 }
 0x1b1   :  { %v250_v52 = vmul.f32 1.442695, %v238_v50  ;;  %v239_v53 = vsub.f32 %v207_v34, %v229_v51 }
 0x1b2   :  { %v231_v54 = vpop.xlane.xlu0 %230 }
 0x1b3   :  { %772 = vpow2.f32 %v250_v52  ;;  %v252_v55 = vmul.f32 1.442695, %v239_v53  ;;  %v240_v56 = vsub.f32 %v212_v35, %v231_v54 }
 0x1b4   :  { %v765_v57 = vpop.eup %764  ;;  %v233_v58 = vpop.xlane.xlu1 %232 }
 0x1b5   :  { %774 = vpow2.f32 %v252_v55  ;;  %v254_v59 = vmul.f32 1.442695, %v240_v56  ;;  %v241_v60 = vsub.f32 %v215_v36, %v233_v58  ;;  %262 = vadd.xlane.f32.xlu0 %v765_v57  ;;  %v767_v61 = vpop.eup %766 }
 0x1b7   :  { %776 = vpow2.f32 %v254_v59  ;;  %v256_v62 = vmul.f32 1.442695, %v241_v60 }
 0x1b8   :  { %v769_v63 = vpop.eup %768 }
 0x1b9   :  { %778 = vpow2.f32 %v256_v62  ;;  %264 = vadd.xlane.f32.xlu1 %v769_v63  ;;  %258 = vadd.xlane.f32.xlu0 %v767_v61  ;;  %v771_v2 = vpop.eup %770 }
 0x1bd   :  { %v773_v4 = vpop.eup %772  ;;  %260 = vadd.xlane.f32.xlu1 %v771_v2 }
 0x1be   :  { %266 = vadd.xlane.f32.xlu0 %v773_v4 }
 0x1bf   :  { %v974_v5 = vpop.eup %774 }
 0x1c1   :  { %v976_v6 = vpop.eup %776  ;;  %268 = vadd.xlane.f32.xlu1 %v974_v5 }
 0x1c2   :  { %270 = vadd.xlane.f32.xlu0 %v976_v6 }
 0x1c3   :  { %v980_v8 = vpop.eup %778 }
 0x1c5   :  { %272 = vadd.xlane.f32.xlu1 %v980_v8 }
 0x242   :  { %v263_v0 = vpop.xlane.xlu0 %262 }
 0x243   :  { %780 = vrcp.f32 %v263_v0 }
 0x246   :  { %v265_v1 = vpop.xlane.xlu1 %264  ;;  %v259_v3 = vpop.xlane.xlu0 %258 }
 0x247   :  { %782 = vrcp.f32 %v265_v1 }
 0x248   :  { %784 = vrcp.f32 %v259_v3 }
 0x24a   :  { %v261_v7 = vpop.xlane.xlu1 %260 }
 0x24b   :  { %786 = vrcp.f32 %v261_v7  ;;  %v267_v9 = vpop.xlane.xlu0 %266 }
 0x24c   :  { %788 = vrcp.f32 %v267_v9 }
 0x24d   :  { %v781_v11 = vpop.eup %780 }
 0x24e   :  { %v284_v12 = vmul.f32 %v781_v11, %v765_v57  ;;  %v269_v14 = vpop.xlane.xlu1 %268 }
 0x24f   :  { %790 = vrcp.f32 %v269_v14  ;;  %v271_v13 = vpop.xlane.xlu0 %270 }
 0x250   :  { %v302_v16 = vrot.slane %v284_v12, 4  ;;  %792 = vrcp.f32 %v271_v13 }
 0x251   :  { %v783_v15 = vpop.eup %782 }
 0x252   :  { %v785_v17 = vpop.eup %784  ;;  %v303_v18 = vadd.f32 %v302_v16, %v284_v12  ;;  %v285_v19 = vmul.f32 %v783_v15, %v769_v63  ;;  %v273_v20 = vpop.xlane.xlu1 %272 }
 0x253   :  { %v282_v21 = vmul.f32 %v785_v17, %v767_v61  ;;  %794 = vrcp.f32 %v273_v20 }
 0x254   :  { %v304_v22 = vrot.slane %v303_v18, 2  ;;  %v308_v23 = vrot.slane %v285_v19, 4 }
 0x255   :  { %v787_v24 = vpop.eup %786  ;;  %v290_v25 = vrot.slane %v282_v21, 4 }
 0x256   :  { %v789_v26 = vpop.eup %788  ;;  %v305_v27 = vadd.f32 %v304_v22, %v303_v18  ;;  %v309_v28 = vadd.f32 %v308_v23, %v285_v19  ;;  %v283_v29 = vmul.f32 %v787_v24, %v771_v2 }
 0x257   :  { %v291_v30 = vadd.f32 %v290_v25, %v282_v21  ;;  %v286_v31 = vmul.f32 %v789_v26, %v773_v4 }
 0x258   :  { %v306_v32 = vrot.slane %v305_v27, 1  ;;  %v310_v33 = vrot.slane %v309_v28, 2  ;;  %v296_v34 = vrot.slane %v283_v29, 4 }
 0x259   :  { %v791_v35 = vpop.eup %790  ;;  %v292_v36 = vrot.slane %v291_v30, 2  ;;  %v314_v37 = vrot.slane %v286_v31, 4 }
 0x25a   :  { %v793_v38 = vpop.eup %792  ;;  %v311_v39 = vadd.f32 %v310_v33, %v309_v28  ;;  %v297_v40 = vadd.f32 %v296_v34, %v283_v29  ;;  %v287_v41 = vmul.f32 %v791_v35, %v974_v5  ;;  %v307_v45 = vadd.f32 %v306_v32, %v305_v27 }
 0x25b   :  { %v293_v42 = vadd.f32 %v292_v36, %v291_v30  ;;  %v315_v43 = vadd.f32 %v314_v37, %v286_v31  ;;  %v288_v44 = vmul.f32 %v793_v38, %v976_v6 }
 0x25c   :  { %v312_v46 = vrot.slane %v311_v39, 1  ;;  %v298_v47 = vrot.slane %v297_v40, 2  ;;  %v320_v48 = vrot.slane %v287_v41, 4  ;;  %v340_v60 = vmul.f32 0.125, %v307_v45 }
 0x25d   :  { %v795_v49 = vpop.eup %794  ;;  %v294_v50 = vrot.slane %v293_v42, 1  ;;  %v316_v51 = vrot.slane %v315_v43, 2  ;;  %v326_v52 = vrot.slane %v288_v44, 4 }
 0x25e   :  { %v313_v53 = vadd.f32 %v312_v46, %v311_v39  ;;  %v299_v54 = vadd.f32 %v298_v47, %v297_v40  ;;  %v321_v55 = vadd.f32 %v320_v48, %v287_v41  ;;  %v289_v59 = vmul.f32 %v795_v49, %v980_v8 }
 0x25f   :  { %v295_v56 = vadd.f32 %v294_v50, %v293_v42  ;;  %v317_v57 = vadd.f32 %v316_v51, %v315_v43  ;;  %v327_v58 = vadd.f32 %v326_v52, %v288_v44  ;;  %v348_v8 = vpack.c.bf16 %v340_v60, %v340_v60  ;;  %v756_v50 = vld [vmem:[%s1088_s2] sm:$0xff]  }
 0x260   :  { %v300_v61 = vrot.slane %v299_v54, 1  ;;  %v322_v62 = vrot.slane %v321_v55, 2  ;;  %v332_v5 = vrot.slane %v289_v59, 4  ;;  %v341_v6 = vmul.f32 0.125, %v313_v53 }
 0x261   :  { %v338_v63 = vmul.f32 0.125, %v295_v56  ;;  %v318_v2 = vrot.slane %v317_v57, 1  ;;  %v328_v4 = vrot.slane %v327_v58, 2  ;;  %v364_v31 = vunpack.c.l.b16 %v348_v8  ;;  %v757_v56 = vld [vmem:[%s1088_s2 + $0x8] sm:$0xff]  }
 0x262   :  { %v301_v0 = vadd.f32 %v300_v61, %v299_v54  ;;  %v323_v1 = vadd.f32 %v322_v62, %v321_v55  ;;  %v333_v9 = vadd.f32 %v332_v5, %v289_v59  ;;  %v349_v19 = vpack.c.bf16 %v341_v6, %v341_v6  ;;  %v760_v62 = vld [vmem:[%s1088_s2 + $0x20] sm:$0xff]   ;;  %v762_v5 = vld [vmem:[%s1088_s2 + $0x30] sm:$0xff]  }
 0x263   :  { %v319_v3 = vadd.f32 %v318_v2, %v317_v57  ;;  %v329_v7 = vadd.f32 %v328_v4, %v327_v58  ;;  %v346_v11 = vpack.c.bf16 %v338_v63, %v338_v63  ;;  %v502_v55 = vsel %vm116_vm0, %v756_v50, 0  ;;  %v758_v58 = vld [vmem:[%s1088_s2 + $0x10] sm:$0xff]   ;;  %v761_v2 = vld [vmem:[%s1088_s2 + $0x28] sm:$0xff]  }
 0x264   :  { %v339_v12 = vmul.f32 0.125, %v301_v0  ;;  %v324_v14 = vrot.slane %v323_v1, 1  ;;  %v334_v13 = vrot.slane %v333_v9, 2  ;;  %v365_v34 = vunpack.c.l.b16 %v349_v19  ;;  %v763_v0 = vld [vmem:[%s1088_s2 + $0x38] sm:$0xff]  }
 0x265   :  { %v330_v16 = vrot.slane %v329_v7, 1  ;;  %v342_v15 = vmul.f32 0.125, %v319_v3  ;;  %v362_v25 = vunpack.c.l.b16 %v346_v11  ;;  %v505_v57 = vsel %vm116_vm0, %v757_v56, 0 }
 0x266   :  { %v347_v17 = vpack.c.bf16 %v339_v12, %v339_v12  ;;  %v325_v18 = vadd.f32 %v324_v14, %v323_v1  ;;  %v573_v20 = vsel %vm370_vm2, %v339_v12, %v338_v63  ;;  %v335_v22 = vadd.f32 %v334_v13, %v333_v9 }
 0x267   :  { %v331_v21 = vadd.f32 %v330_v16, %v329_v7  ;;  %v350_v23 = vpack.c.bf16 %v342_v15, %v342_v15  ;;  %v574_v24 = vsel %vm372_vm3, %v340_v60, %v573_v20  ;;  %v508_v59 = vsel %vm116_vm0, %v758_v58, 0  ;;  %v759_v60 = vld [vmem:[%s1088_s2 + $0x18] sm:$0xff]  }
 0x268   :  { %v363_v26 = vunpack.c.l.b16 %v347_v17  ;;  %v343_v27 = vmul.f32 0.125, %v325_v18  ;;  %v575_v28 = vsel %vm374_vm4, %v341_v6, %v574_v24  ;;  %v336_v29 = vrot.slane %v335_v22, 1 }
 0x269   :  { %v344_v30 = vmul.f32 0.125, %v331_v21  ;;  %v576_v32 = vsel %vm376_vm5, %v342_v15, %v575_v28  ;;  %v366_v35 = vunpack.c.l.b16 %v350_v23  ;;  %v511_v61 = vsel %vm116_vm0, %v759_v60, 0 }
 0x26a   :  { %v351_v33 = vpack.c.bf16 %v343_v27, %v343_v27  ;;  %v371_v36 = vsel %vm370_vm2, %v363_v26, %v362_v25  ;;  %v337_v37 = vadd.f32 %v336_v29, %v335_v22  ;;  %v577_v40 = vsel %vm378_vm6, %v343_v27, %v576_v32 }
 0x26b   :  { %v352_v38 = vpack.c.bf16 %v344_v30, %v344_v30  ;;  %v373_v39 = vsel %vm372_vm3, %v364_v31, %v371_v36  ;;  %v578_v46 = vsel %vm380_vm7, %v344_v30, %v577_v40  ;;  %v514_v63 = vsel %vm116_vm0, %v760_v62, 0 }
 0x26c   :  { %v367_v41 = vunpack.c.l.b16 %v351_v33  ;;  %v375_v42 = vsel %vm374_vm4, %v365_v34, %v373_v39  ;;  %v345_v43 = vmul.f32 0.125, %v337_v37  ;;  %v517_v4 = vsel %vm116_vm0, %v761_v2, 0 }
 0x26d   :  { %v377_v44 = vsel %vm376_vm5, %v366_v35, %v375_v42  ;;  %v368_v45 = vunpack.c.l.b16 %v352_v38  ;;  %v520_v6 = vsel %vm116_vm0, %v762_v5, 0  ;;  %v523_v1 = vsel %vm116_vm0, %v763_v0, 0 }
 0x26e   :  { %v353_v47 = vpack.c.bf16 %v345_v43, %v345_v43  ;;  %v379_v48 = vsel %vm378_vm6, %v367_v41, %v377_v44  ;;  %v579_v49 = vsel %vm382_vm8, %v345_v43, %v578_v46 }
 0x26f   :  { %581 = vst [vmem:[#allocation2] sm:$0xff] %v579_v49  ;;  %v381_v52 = vsel %vm380_vm7, %v368_v45, %v379_v48 }
 0x270   :  { %v369_v51 = vunpack.c.l.b16 %v353_v47 }
 0x272   :  { %v383_v53 = vsel %vm382_vm8, %v369_v51, %v381_v52 }
 0x273   :  { %v384_v54 = vpack.c.b16 %v383_v53, %v383_v53 }
 0x275   :  { %709 = vmatmul.mubr.bf16.vlgmr.msra.gmra.mrb[0].mxu1 %v384_v54 }
 0x276   :  { %713 = vmatpush3.bf16.xpose.msra.mxu1 %v502_v55  ;;  %728 = vmatprep.mubr.msk.bf16.mxu1 %vm845_vm1, %v844_v10 }
 0x277   :  { %714 = vmatprep.subr.bf16.mxu1 %v844_v10 }
 0x27e   :  { %715 = vmatpush3.bf16.xpose.msra.mxu1 %v505_v57 }
 0x27f   :  { %716 = vmatprep.subr.bf16.mxu1 %v844_v10 }
 0x286   :  { %717 = vmatpush3.bf16.xpose.msra.mxu1 %v508_v59 }
 0x287   :  { %718 = vmatprep.subr.bf16.mxu1 %v844_v10 }
 0x28e   :  { %719 = vmatpush3.bf16.xpose.msra.mxu1 %v511_v61 }
 0x28f   :  { %720 = vmatprep.subr.bf16.mxu1 %v844_v10 }
 0x296   :  { %721 = vmatpush3.bf16.xpose.msra.mxu1 %v514_v63 }
 0x297   :  { %722 = vmatprep.subr.bf16.mxu1 %v844_v10 }
 0x29e   :  { %723 = vmatpush3.bf16.xpose.msra.mxu1 %v517_v4 }
 0x29f   :  { %724 = vmatprep.subr.bf16.mxu1 %v844_v10 }
 0x2a6   :  { %725 = vmatpush3.bf16.xpose.msra.mxu1 %v520_v6 }
 0x2a7   :  { %726 = vmatprep.subr.bf16.mxu1 %v844_v10 }
 0x2ae   :  { %727 = vmatpush3.bf16.xpose.msra.mxu1 %v523_v1 }
 0x348   :  { %v428_v3 = vpop.f32.mrb[0].mxu1 }
 0x349   :  { %v434_v7 = vpack.c.bf16 %v428_v3, %v428_v3  ;;  %v710_v9 = vpop.f32.mrb[1].mxu1 }
 0x34a   :  { %v431_v11 = vpop.f32.mrb[2].mxu1 }
 0x34b   :  { %v711_v12 = vpop.f32.mrb[3].mxu1  ;;  %729 = vmatmul.mubr.msk.bf16.vlgmr.msra.gmra.mrb[4].mxu1 %vm116_vm0, %v434_v7 }
 0x34c   :  { %807 = shalt.err (!%p804_p4)
}
 0x34d   :  { %s808_s16 = scalar_lea.hbm %s1091_s5, 128 }
 0x34e   :  { %p809_p5 = scmp.ne.s32.totalorder %s1091_s5, %s808_s16  ;;  %p812_p6 = scmp.lt.u32.totalorder %s808_s16, %s1091_s5 }
 0x350   :  { %p814_p7 = pnand %p812_p6, %p809_p5 }
 0x352   :  { %817 = shalt.err (!%p814_p7)
}
 0x353   :  { %592 = dma.vmem_to_hbm [thread:$0]  %s590_s13, 128, %s1091_s5, [#allocation3]   ;;  %v628_v10 = vld [vmem:[%s1089_s3] ss:$0 sm:$0xff] }
 0x354   :  { %s847_s22 = smov [#allocation4]  }
 0x355   :  { %s599_s23 = sshll.u32 %s847_s22, 4  ;;  %s600_s23 = int_to_ptr.vmem [resolvable:$true] %s599_s23 }
 0x356   :  { %s818_s24 = scalar_lea.vmem %s600_s23, 128  ;;  %p823_p9 = scmp.lt.s32.totalorder %s600_s23, %s600_s23 }
 0x357   :  { %p819_p8 = scmp.ne.s32.totalorder %s600_s23, %s818_s24  ;;  %p824_p10 = scmp.lt.s32.totalorder %s818_s24, %s818_s24 }
 0x359   :  { %p825_p11 = por %p824_p10, %p823_p9 }
 0x35b   :  { %p826_p12 = pnand %p825_p11, %p819_p8 }
 0x41e   :  { %v559_v14 = vpop.f32.mrb[4].mxu1 }
 0x41f   :  { %v560_v8 = vadd.f32 %v628_v10, %v559_v14  ;;  %v730_v13 = vpop.f32.mrb[5].mxu1 }
 0x420   :  { %v562_v16 = vpop.f32.mrb[6].mxu1 }
 0x421   :  { %582 = vst [vmem:[#allocation4] sm:$0xff] %v560_v8  ;;  %v731_v15 = vpop.f32.mrb[7].mxu1 }
 0x422   :  { %829 = shalt.err (!%p826_p12)
}
 0x423   :  { %s830_s3 = scalar_lea.hbm %s1092_s6, 128 }
 0x424   :  { %p831_p13 = scmp.ne.s32.totalorder %s1092_s6, %s830_s3  ;;  %p834_p0 = scmp.lt.u32.totalorder %s830_s3, %s1092_s6 }
 0x426   :  { %p836_p1 = pnand %p834_p0, %p831_p13 }
 0x428   :  { %839 = shalt.err (!%p836_p1)
}
 0x429   :  { %602 = dma.vmem_to_hbm [thread:$0]  %s600_s23, 128, %s1092_s6, [#allocation5]  }
 0x42a   :  { %840 = dma.done.wait [#allocation3], 128  }
 0x42b   :  { %841 = vsyncadd [#allocation3], 4294967168 }
 0x42c   :  { %842 = dma.done.wait [#allocation5], 128  }
 0x42d   :  { %843 = vsyncadd [#allocation5], 4294967168 }
 0x42e   :  { %609 = vsyncpa [#allocation3], 1 }
 0x42f   :  { %610 = vsyncpa [#allocation5], 1 }

// kernel: tpu_custom_call.1
= control target key start
LH: loop header
LB: loop body
LE: loop exit
PB: predicated region body
PF: predicated region fallthrough
CT: control target
= control target key end

     0   :  { %12 = vsyncpa [#allocation3], 0  ;;  %vm109_vm0 = vcmask 261120   ;;  %s1094_s0 = inlined_call_operand.vmem [shape: bf16[8,8,32], index: 0, kind: input, shape index: {}]   ;;  %s1095_s1 = inlined_call_operand.vmem [shape: bf16[128,32], index: 1, kind: input, shape index: {}]   ;;  %s1096_s2 = inlined_call_operand.vmem [shape: bf16[128,32], index: 2, kind: input, shape index: {}]   ;;  %s1097_s3 = inlined_call_operand.vmem [shape: f32[1,128], index: 3, kind: input, shape index: {}]   ;;  %s1098_s4 = inlined_call_operand.vmem [shape: f32[1,128], index: 4, kind: input, shape index: {}]   ;;  %s1099_s5 = inlined_call_operand.hbm [shape: f32[8,128], index: 5, kind: output, shape index: {0}]   ;;  %s1100_s6 = inlined_call_operand.hbm [shape: f32[8,128], index: 6, kind: output, shape index: {1}]  }
   0x1   :  { %v894_v0 = vld [vmem:[%s1095_s1] sm:$0xff]   ;;  %v899_v1 = vld [vmem:[%s1095_s1 + $0x8] sm:$0xff]   ;;  %v910_v3 = vld [vmem:[%s1095_s1 + $0x10] sm:$0xff]  }
   0x2   :  { %740 = vmatprep.subr.msk.bf16.mxu0 %vm109_vm0, %v894_v0  ;;  %v123_v2 = vsel %vm109_vm0, %v894_v0, 0  ;;  %v126_v4 = vsel %vm109_vm0, %v899_v1, 0  ;;  %v760_v5 = vld [vmem:[%s1094_s0] sm:$0xff]   ;;  %v129_v6 = vsel %vm109_vm0, %v910_v3, 0  ;;  %v925_v7 = vld [vmem:[%s1095_s1 + $0x18] sm:$0xff]  }
   0x3   :  { %677 = vmatpush3.bf16.xpose.msra.mxu0 %v123_v2  ;;  %692 = vmatprep.mubr.msk.bf16.mxu0 %vm109_vm0, %v760_v5 }
   0x4   :  { %741 = vmatprep.subr.msk.bf16.mxu0 %vm109_vm0, %v899_v1 }
   0xb   :  { %679 = vmatpush3.bf16.xpose.msra.mxu0 %v126_v4 }
   0xc   :  { %742 = vmatprep.subr.msk.bf16.mxu0 %vm109_vm0, %v910_v3 }
   0xd   :  { %13 = vsyncpa [#allocation5], 0  ;;  %v132_v8 = vsel %vm109_vm0, %v925_v7, 0  ;;  %v934_v9 = vld [vmem:[%s1095_s1 + $0x20] sm:$0xff]   ;;  %v943_v11 = vld [vmem:[%s1095_s1 + $0x28] sm:$0xff]   ;;  %vm853_vm1 = vmmov 0  }
   0xe   :  { %v135_v10 = vsel %vm109_vm0, %v934_v9, 0  ;;  %v138_v12 = vsel %vm109_vm0, %v943_v11, 0  ;;  %v952_v13 = vld [vmem:[%s1095_s1 + $0x30] sm:$0xff]   ;;  %v961_v15 = vld [vmem:[%s1095_s1 + $0x38] sm:$0xff]   ;;  %v761_v17 = vld [vmem:[%s1094_s0 + $0x8] sm:$0xff]   ;;  %vm378_vm2 = vcmask 1041409  }
   0xf   :  { %v141_v14 = vsel %vm109_vm0, %v952_v13, 0  ;;  %v144_v16 = vsel %vm109_vm0, %v961_v15, 0  ;;  %v762_v18 = vld [vmem:[%s1094_s0 + $0x10] sm:$0xff]   ;;  %v763_v19 = vld [vmem:[%s1094_s0 + $0x18] sm:$0xff]   ;;  %v635_v20 = vld [vmem:[%s1098_s4] ss:$0 sm:$0xff] }
  0x10   :  { %vm380_vm3 = vcmask 1042434   ;;  %vm382_vm4 = vcmask 1043459   ;;  %vm384_vm5 = vcmask 1044484   ;;  %vm386_vm6 = vcmask 1045509   ;;  %s854_s12 = smov [#allocation2]  }
  0x11   :  { %vm388_vm7 = vcmask 1046534   ;;  %vm390_vm8 = vcmask 1047559   ;;  %s597_s13 = sshll.u32 %s854_s12, 4  ;;  %s598_s13 = int_to_ptr.vmem [resolvable:$true] %s597_s13 }
  0x12   :  { %s804_s14 = scalar_lea.vmem %s598_s13, 128  ;;  %p809_p1 = scmp.lt.s32.totalorder %s598_s13, %s598_s13 }
  0x13   :  { %681 = vmatpush3.bf16.xpose.msra.mxu0 %v129_v6  ;;  %p805_p0 = scmp.ne.s32.totalorder %s598_s13, %s804_s14  ;;  %p810_p2 = scmp.lt.s32.totalorder %s804_s14, %s804_s14 }
  0x14   :  { %743 = vmatprep.subr.msk.bf16.mxu0 %vm109_vm0, %v925_v7 }
  0x15   :  { %p811_p3 = por %p810_p2, %p809_p1 }
  0x17   :  { %p812_p4 = pnand %p811_p3, %p805_p0 }
  0x1b   :  { %683 = vmatpush3.bf16.xpose.msra.mxu0 %v132_v8 }
  0x1c   :  { %744 = vmatprep.subr.msk.bf16.mxu0 %vm109_vm0, %v934_v9 }
  0x23   :  { %685 = vmatpush3.bf16.xpose.msra.mxu0 %v135_v10  ;;  %v852_v10 = vmov 0.0  }
  0x24   :  { %745 = vmatprep.subr.msk.bf16.mxu0 %vm109_vm0, %v943_v11  ;;  %700 = vmatprep.subr.bf16.mxu1 %v852_v10 }
  0x25   :  { %701 = vmatpush3.bf16.msra.mxu1 %v894_v0  ;;  %716 = vmatprep.mubr.msk.bf16.mxu1 %vm853_vm1, %v852_v10 }
  0x26   :  { %702 = vmatprep.subr.bf16.mxu1 %v852_v10 }
  0x29   :  { %703 = vmatpush3.bf16.msra.mxu1 %v899_v1 }
  0x2a   :  { %704 = vmatprep.subr.bf16.mxu1 %v852_v10 }
  0x2b   :  { %687 = vmatpush3.bf16.xpose.msra.mxu0 %v138_v12 }
  0x2c   :  { %746 = vmatprep.subr.msk.bf16.mxu0 %vm109_vm0, %v952_v13 }
  0x2d   :  { %705 = vmatpush3.bf16.msra.mxu1 %v910_v3 }
  0x2e   :  { %706 = vmatprep.subr.bf16.mxu1 %v852_v10 }
  0x31   :  { %707 = vmatpush3.bf16.msra.mxu1 %v925_v7 }
  0x32   :  { %708 = vmatprep.subr.bf16.mxu1 %v852_v10 }
  0x33   :  { %689 = vmatpush3.bf16.xpose.msra.mxu0 %v141_v14 }
  0x34   :  { %747 = vmatprep.subr.msk.bf16.mxu0 %vm109_vm0, %v961_v15 }
  0x35   :  { %709 = vmatpush3.bf16.msra.mxu1 %v934_v9 }
  0x36   :  { %710 = vmatprep.subr.bf16.mxu1 %v852_v10 }
  0x39   :  { %711 = vmatpush3.bf16.msra.mxu1 %v943_v11 }
  0x3a   :  { %712 = vmatprep.subr.bf16.mxu1 %v852_v10 }
  0x3b   :  { %691 = vmatpush3.bf16.xpose.msra.mxu0 %v144_v16 }
  0x3d   :  { %713 = vmatpush3.bf16.msra.mxu1 %v952_v13 }
  0x3e   :  { %714 = vmatprep.subr.bf16.mxu1 %v852_v10 }
  0x41   :  { %715 = vmatpush3.bf16.msra.mxu1 %v961_v15 }
  0x42   :  { %693 = vmatmul.mubr.msk.bf16.vlgmr.msra.gmra.mrb[0].mxu0 %vm109_vm0, %v761_v17  ;;  %720 = vmatprep.subr.bf16.mxu1 %v852_v10 }
  0x43   :  { %696 = vmatprep.mubr.msk.bf16.mxu0 %vm109_vm0, %v762_v18 }
  0x4a   :  { %697 = vmatmul.mubr.msk.bf16.gmra.mrb[4].mxu0 %vm109_vm0, %v763_v19 }
 0x115   :  { %v694_v21 = vpop.f32.mrb[0].mxu0 }
 0x116   :  { %v220_v22 = vadd.f32 %v694_v21, %v635_v20  ;;  %v180_v23 = vpop.f32.mrb[1].mxu0 }
 0x117   :  { %v218_v24 = vadd.f32 %v635_v20, %v180_v23  ;;  %v695_v25 = vpop.f32.mrb[2].mxu0 }
 0x118   :  { %230 = vmax.xlane.f32.xlu1 %v220_v22  ;;  %v183_v26 = vpop.f32.mrb[3].mxu0  ;;  %v221_v27 = vadd.f32 %v695_v25, %v635_v20 }
 0x119   :  { %226 = vmax.xlane.f32.xlu0 %v218_v24  ;;  %v219_v28 = vadd.f32 %v635_v20, %v183_v26 }
 0x11c   :  { %232 = vmax.xlane.f32.xlu1 %v221_v27 }
 0x11d   :  { %228 = vmax.xlane.f32.xlu0 %v219_v28  ;;  %v698_v29 = vpop.f32.mrb[4].mxu0 }
 0x11e   :  { %v196_v30 = vpop.f32.mrb[5].mxu0  ;;  %v224_v35 = vadd.f32 %v698_v29, %v635_v20 }
 0x11f   :  { %v222_v31 = vadd.f32 %v635_v20, %v196_v30  ;;  %v699_v32 = vpop.f32.mrb[6].mxu0 }
 0x120   :  { %v199_v33 = vpop.f32.mrb[7].mxu0  ;;  %v225_v36 = vadd.f32 %v699_v32, %v635_v20 }
 0x121   :  { %v223_v34 = vadd.f32 %v635_v20, %v199_v33  ;;  %234 = vmax.xlane.f32.xlu0 %v222_v31 }
 0x123   :  { %236 = vmax.xlane.f32.xlu1 %v223_v34 }
 0x125   :  { %238 = vmax.xlane.f32.xlu0 %v224_v35 }
 0x127   :  { %240 = vmax.xlane.f32.xlu1 %v225_v36 }
 0x1a5   :  { %v231_v37 = vpop.xlane.xlu1 %230 }
 0x1a6   :  { %v244_v38 = vsub.f32 %v220_v22, %v231_v37  ;;  %v227_v39 = vpop.xlane.xlu0 %226 }
 0x1a7   :  { %v242_v40 = vsub.f32 %v218_v24, %v227_v39 }
 0x1a8   :  { %v254_v41 = vmul.f32 1.442695, %v244_v38 }
 0x1a9   :  { %v250_v42 = vmul.f32 1.442695, %v242_v40  ;;  %v233_v43 = vpop.xlane.xlu1 %232 }
 0x1aa   :  { %772 = vpow2.f32 %v254_v41  ;;  %v245_v44 = vsub.f32 %v221_v27, %v233_v43  ;;  %v229_v45 = vpop.xlane.xlu0 %228 }
 0x1ab   :  { %v243_v46 = vsub.f32 %v219_v28, %v229_v45  ;;  %774 = vpow2.f32 %v250_v42 }
 0x1ac   :  { %v256_v47 = vmul.f32 1.442695, %v245_v44 }
 0x1ad   :  { %v252_v48 = vmul.f32 1.442695, %v243_v46 }
 0x1ae   :  { %776 = vpow2.f32 %v256_v47  ;;  %v235_v49 = vpop.xlane.xlu0 %234 }
 0x1af   :  { %v246_v50 = vsub.f32 %v222_v31, %v235_v49  ;;  %778 = vpow2.f32 %v252_v48 }
 0x1b0   :  { %v237_v51 = vpop.xlane.xlu1 %236 }
 0x1b1   :  { %v258_v52 = vmul.f32 1.442695, %v246_v50  ;;  %v247_v53 = vsub.f32 %v223_v34, %v237_v51 }
 0x1b2   :  { %v239_v54 = vpop.xlane.xlu0 %238 }
 0x1b3   :  { %780 = vpow2.f32 %v258_v52  ;;  %v260_v55 = vmul.f32 1.442695, %v247_v53  ;;  %v248_v56 = vsub.f32 %v224_v35, %v239_v54 }
 0x1b4   :  { %v773_v57 = vpop.eup %772  ;;  %v241_v58 = vpop.xlane.xlu1 %240 }
 0x1b5   :  { %782 = vpow2.f32 %v260_v55  ;;  %v262_v59 = vmul.f32 1.442695, %v248_v56  ;;  %v249_v60 = vsub.f32 %v225_v36, %v241_v58  ;;  %270 = vadd.xlane.f32.xlu0 %v773_v57  ;;  %v775_v61 = vpop.eup %774 }
 0x1b7   :  { %784 = vpow2.f32 %v262_v59  ;;  %v264_v62 = vmul.f32 1.442695, %v249_v60 }
 0x1b8   :  { %v777_v63 = vpop.eup %776 }
 0x1b9   :  { %786 = vpow2.f32 %v264_v62  ;;  %266 = vadd.xlane.f32.xlu0 %v775_v61  ;;  %272 = vadd.xlane.f32.xlu1 %v777_v63  ;;  %v779_v2 = vpop.eup %778 }
 0x1bd   :  { %v781_v4 = vpop.eup %780  ;;  %268 = vadd.xlane.f32.xlu1 %v779_v2 }
 0x1be   :  { %274 = vadd.xlane.f32.xlu0 %v781_v4 }
 0x1bf   :  { %v982_v5 = vpop.eup %782 }
 0x1c1   :  { %v984_v6 = vpop.eup %784  ;;  %276 = vadd.xlane.f32.xlu1 %v982_v5 }
 0x1c2   :  { %278 = vadd.xlane.f32.xlu0 %v984_v6 }
 0x1c3   :  { %v988_v8 = vpop.eup %786 }
 0x1c5   :  { %280 = vadd.xlane.f32.xlu1 %v988_v8 }
 0x242   :  { %v271_v0 = vpop.xlane.xlu0 %270 }
 0x243   :  { %788 = vrcp.f32 %v271_v0 }
 0x246   :  { %v267_v1 = vpop.xlane.xlu0 %266  ;;  %v273_v3 = vpop.xlane.xlu1 %272 }
 0x247   :  { %790 = vrcp.f32 %v267_v1 }
 0x248   :  { %792 = vrcp.f32 %v273_v3 }
 0x24a   :  { %v269_v7 = vpop.xlane.xlu1 %268 }
 0x24b   :  { %794 = vrcp.f32 %v269_v7  ;;  %v275_v9 = vpop.xlane.xlu0 %274 }
 0x24c   :  { %796 = vrcp.f32 %v275_v9 }
 0x24d   :  { %v789_v11 = vpop.eup %788 }
 0x24e   :  { %v292_v12 = vmul.f32 %v789_v11, %v773_v57  ;;  %v277_v14 = vpop.xlane.xlu1 %276 }
 0x24f   :  { %798 = vrcp.f32 %v277_v14  ;;  %v279_v13 = vpop.xlane.xlu0 %278 }
 0x250   :  { %v310_v16 = vrot.slane %v292_v12, 4  ;;  %800 = vrcp.f32 %v279_v13 }
 0x251   :  { %v791_v15 = vpop.eup %790 }
 0x252   :  { %v793_v17 = vpop.eup %792  ;;  %v311_v18 = vadd.f32 %v310_v16, %v292_v12  ;;  %v290_v19 = vmul.f32 %v791_v15, %v775_v61  ;;  %v281_v20 = vpop.xlane.xlu1 %280 }
 0x253   :  { %v293_v21 = vmul.f32 %v793_v17, %v777_v63  ;;  %802 = vrcp.f32 %v281_v20 }
 0x254   :  { %v312_v22 = vrot.slane %v311_v18, 2  ;;  %v298_v23 = vrot.slane %v290_v19, 4 }
 0x255   :  { %v795_v24 = vpop.eup %794  ;;  %v316_v25 = vrot.slane %v293_v21, 4 }
 0x256   :  { %v797_v26 = vpop.eup %796  ;;  %v313_v27 = vadd.f32 %v312_v22, %v311_v18  ;;  %v299_v28 = vadd.f32 %v298_v23, %v290_v19  ;;  %v291_v29 = vmul.f32 %v795_v24, %v779_v2 }
 0x257   :  { %v317_v30 = vadd.f32 %v316_v25, %v293_v21  ;;  %v294_v31 = vmul.f32 %v797_v26, %v781_v4 }
 0x258   :  { %v300_v32 = vrot.slane %v299_v28, 2  ;;  %v304_v33 = vrot.slane %v291_v29, 4  ;;  %v314_v35 = vrot.slane %v313_v27, 1 }
 0x259   :  { %v799_v34 = vpop.eup %798  ;;  %v318_v36 = vrot.slane %v317_v30, 2  ;;  %v322_v37 = vrot.slane %v294_v31, 4 }
 0x25a   :  { %v801_v38 = vpop.eup %800  ;;  %v301_v39 = vadd.f32 %v300_v32, %v299_v28  ;;  %v305_v40 = vadd.f32 %v304_v33, %v291_v29  ;;  %v295_v41 = vmul.f32 %v799_v34, %v982_v5  ;;  %v315_v49 = vadd.f32 %v314_v35, %v313_v27 }
 0x25b   :  { %v319_v42 = vadd.f32 %v318_v36, %v317_v30  ;;  %v323_v43 = vadd.f32 %v322_v37, %v294_v31  ;;  %v296_v44 = vmul.f32 %v801_v38, %v984_v6 }
 0x25c   :  { %v302_v45 = vrot.slane %v301_v39, 1  ;;  %v306_v46 = vrot.slane %v305_v40, 2  ;;  %v328_v47 = vrot.slane %v295_v41, 4  ;;  %v348_v63 = vmul.f32 0.125, %v315_v49 }
 0x25d   :  { %v803_v48 = vpop.eup %802  ;;  %v320_v50 = vrot.slane %v319_v42, 1  ;;  %v324_v51 = vrot.slane %v323_v43, 2  ;;  %v334_v52 = vrot.slane %v296_v44, 4 }
 0x25e   :  { %v303_v53 = vadd.f32 %v302_v45, %v301_v39  ;;  %v307_v54 = vadd.f32 %v306_v46, %v305_v40  ;;  %v329_v55 = vadd.f32 %v328_v47, %v295_v41  ;;  %v297_v59 = vmul.f32 %v803_v48, %v988_v8 }
 0x25f   :  { %v321_v56 = vadd.f32 %v320_v50, %v319_v42  ;;  %v325_v57 = vadd.f32 %v324_v51, %v323_v43  ;;  %v335_v58 = vadd.f32 %v334_v52, %v296_v44  ;;  %v356_v8 = vpack.c.bf16 %v348_v63, %v348_v63  ;;  %v764_v50 = vld [vmem:[%s1096_s2] sm:$0xff]  }
 0x260   :  { %v346_v60 = vmul.f32 0.125, %v303_v53  ;;  %v308_v61 = vrot.slane %v307_v54, 1  ;;  %v330_v62 = vrot.slane %v329_v55, 2  ;;  %v340_v5 = vrot.slane %v297_v59, 4 }
 0x261   :  { %v326_v2 = vrot.slane %v325_v57, 1  ;;  %v336_v4 = vrot.slane %v335_v58, 2  ;;  %v349_v6 = vmul.f32 0.125, %v321_v56  ;;  %v372_v31 = vunpack.c.l.b16 %v356_v8  ;;  %v765_v56 = vld [vmem:[%s1096_s2 + $0x8] sm:$0xff]  }
 0x262   :  { %v309_v0 = vadd.f32 %v308_v61, %v307_v54  ;;  %v331_v1 = vadd.f32 %v330_v62, %v329_v55  ;;  %v341_v9 = vadd.f32 %v340_v5, %v297_v59  ;;  %v354_v11 = vpack.c.bf16 %v346_v60, %v346_v60  ;;  %v768_v62 = vld [vmem:[%s1096_s2 + $0x20] sm:$0xff]   ;;  %v770_v5 = vld [vmem:[%s1096_s2 + $0x30] sm:$0xff]  }
 0x263   :  { %v327_v3 = vadd.f32 %v326_v2, %v325_v57  ;;  %v337_v7 = vadd.f32 %v336_v4, %v335_v58  ;;  %v357_v19 = vpack.c.bf16 %v349_v6, %v349_v6  ;;  %v510_v55 = vsel %vm109_vm0, %v764_v50, 0  ;;  %v766_v58 = vld [vmem:[%s1096_s2 + $0x10] sm:$0xff]   ;;  %v769_v2 = vld [vmem:[%s1096_s2 + $0x28] sm:$0xff]  }
 0x264   :  { %v347_v12 = vmul.f32 0.125, %v309_v0  ;;  %v332_v14 = vrot.slane %v331_v1, 1  ;;  %v342_v13 = vrot.slane %v341_v9, 2  ;;  %v370_v25 = vunpack.c.l.b16 %v354_v11  ;;  %v771_v0 = vld [vmem:[%s1096_s2 + $0x38] sm:$0xff]  }
 0x265   :  { %v338_v16 = vrot.slane %v337_v7, 1  ;;  %v350_v15 = vmul.f32 0.125, %v327_v3  ;;  %v373_v34 = vunpack.c.l.b16 %v357_v19  ;;  %v513_v57 = vsel %vm109_vm0, %v765_v56, 0 }
 0x266   :  { %v355_v17 = vpack.c.bf16 %v347_v12, %v347_v12  ;;  %v333_v18 = vadd.f32 %v332_v14, %v331_v1  ;;  %v581_v20 = vsel %vm378_vm2, %v347_v12, %v346_v60  ;;  %v343_v22 = vadd.f32 %v342_v13, %v341_v9  ;;  %v767_v60 = vld [vmem:[%s1096_s2 + $0x18] sm:$0xff]  }
 0x267   :  { %v339_v21 = vadd.f32 %v338_v16, %v337_v7  ;;  %v358_v23 = vpack.c.bf16 %v350_v15, %v350_v15  ;;  %v582_v24 = vsel %vm380_vm3, %v348_v63, %v581_v20  ;;  %v516_v59 = vsel %vm109_vm0, %v766_v58, 0 }
 0x268   :  { %v371_v26 = vunpack.c.l.b16 %v355_v17  ;;  %v351_v27 = vmul.f32 0.125, %v333_v18  ;;  %v583_v28 = vsel %vm382_vm4, %v349_v6, %v582_v24  ;;  %v344_v29 = vrot.slane %v343_v22, 1 }
 0x269   :  { %v352_v30 = vmul.f32 0.125, %v339_v21  ;;  %v584_v32 = vsel %vm384_vm5, %v350_v15, %v583_v28  ;;  %v374_v35 = vunpack.c.l.b16 %v358_v23  ;;  %v519_v61 = vsel %vm109_vm0, %v767_v60, 0 }
 0x26a   :  { %v359_v33 = vpack.c.bf16 %v351_v27, %v351_v27  ;;  %v379_v36 = vsel %vm378_vm2, %v371_v26, %v370_v25  ;;  %v345_v37 = vadd.f32 %v344_v29, %v343_v22  ;;  %v585_v40 = vsel %vm386_vm6, %v351_v27, %v584_v32 }
 0x26b   :  { %v360_v38 = vpack.c.bf16 %v352_v30, %v352_v30  ;;  %v381_v39 = vsel %vm380_vm3, %v372_v31, %v379_v36  ;;  %v586_v46 = vsel %vm388_vm7, %v352_v30, %v585_v40  ;;  %v522_v63 = vsel %vm109_vm0, %v768_v62, 0 }
 0x26c   :  { %v375_v41 = vunpack.c.l.b16 %v359_v33  ;;  %v383_v42 = vsel %vm382_vm4, %v373_v34, %v381_v39  ;;  %v353_v43 = vmul.f32 0.125, %v345_v37  ;;  %v525_v4 = vsel %vm109_vm0, %v769_v2, 0 }
 0x26d   :  { %v385_v44 = vsel %vm384_vm5, %v374_v35, %v383_v42  ;;  %v376_v45 = vunpack.c.l.b16 %v360_v38  ;;  %v528_v6 = vsel %vm109_vm0, %v770_v5, 0  ;;  %v531_v1 = vsel %vm109_vm0, %v771_v0, 0 }
 0x26e   :  { %v361_v47 = vpack.c.bf16 %v353_v43, %v353_v43  ;;  %v387_v48 = vsel %vm386_vm6, %v375_v41, %v385_v44  ;;  %v587_v49 = vsel %vm390_vm8, %v353_v43, %v586_v46 }
 0x26f   :  { %589 = vst [vmem:[#allocation2] sm:$0xff] %v587_v49  ;;  %v389_v52 = vsel %vm388_vm7, %v376_v45, %v387_v48 }
 0x270   :  { %v377_v51 = vunpack.c.l.b16 %v361_v47 }
 0x272   :  { %v391_v53 = vsel %vm390_vm8, %v377_v51, %v389_v52 }
 0x273   :  { %v392_v54 = vpack.c.b16 %v391_v53, %v391_v53 }
 0x275   :  { %717 = vmatmul.mubr.bf16.vlgmr.msra.gmra.mrb[0].mxu1 %v392_v54 }
 0x276   :  { %721 = vmatpush3.bf16.xpose.msra.mxu1 %v510_v55  ;;  %736 = vmatprep.mubr.msk.bf16.mxu1 %vm853_vm1, %v852_v10 }
 0x277   :  { %722 = vmatprep.subr.bf16.mxu1 %v852_v10 }
 0x27e   :  { %723 = vmatpush3.bf16.xpose.msra.mxu1 %v513_v57 }
 0x27f   :  { %724 = vmatprep.subr.bf16.mxu1 %v852_v10 }
 0x286   :  { %725 = vmatpush3.bf16.xpose.msra.mxu1 %v516_v59 }
 0x287   :  { %726 = vmatprep.subr.bf16.mxu1 %v852_v10 }
 0x28e   :  { %727 = vmatpush3.bf16.xpose.msra.mxu1 %v519_v61 }
 0x28f   :  { %728 = vmatprep.subr.bf16.mxu1 %v852_v10 }
 0x296   :  { %729 = vmatpush3.bf16.xpose.msra.mxu1 %v522_v63 }
 0x297   :  { %730 = vmatprep.subr.bf16.mxu1 %v852_v10 }
 0x29e   :  { %731 = vmatpush3.bf16.xpose.msra.mxu1 %v525_v4 }
 0x29f   :  { %732 = vmatprep.subr.bf16.mxu1 %v852_v10 }
 0x2a6   :  { %733 = vmatpush3.bf16.xpose.msra.mxu1 %v528_v6 }
 0x2a7   :  { %734 = vmatprep.subr.bf16.mxu1 %v852_v10 }
 0x2ae   :  { %735 = vmatpush3.bf16.xpose.msra.mxu1 %v531_v1 }
 0x348   :  { %v436_v3 = vpop.f32.mrb[0].mxu1 }
 0x349   :  { %v442_v7 = vpack.c.bf16 %v436_v3, %v436_v3  ;;  %v718_v9 = vpop.f32.mrb[1].mxu1 }
 0x34a   :  { %v439_v11 = vpop.f32.mrb[2].mxu1 }
 0x34b   :  { %v719_v12 = vpop.f32.mrb[3].mxu1  ;;  %737 = vmatmul.mubr.msk.bf16.vlgmr.msra.gmra.mrb[4].mxu1 %vm109_vm0, %v442_v7 }
 0x34c   :  { %815 = shalt.err (!%p812_p4)
}
 0x34d   :  { %s816_s16 = scalar_lea.hbm %s1099_s5, 128 }
 0x34e   :  { %p817_p5 = scmp.ne.s32.totalorder %s1099_s5, %s816_s16  ;;  %p820_p6 = scmp.lt.u32.totalorder %s816_s16, %s1099_s5 }
 0x350   :  { %p822_p7 = pnand %p820_p6, %p817_p5 }
 0x352   :  { %825 = shalt.err (!%p822_p7)
}
 0x353   :  { %600 = dma.vmem_to_hbm [thread:$0]  %s598_s13, 128, %s1099_s5, [#allocation3]   ;;  %v636_v10 = vld [vmem:[%s1097_s3] ss:$0 sm:$0xff] }
 0x354   :  { %s855_s22 = smov [#allocation4]  }
 0x355   :  { %s607_s23 = sshll.u32 %s855_s22, 4  ;;  %s608_s23 = int_to_ptr.vmem [resolvable:$true] %s607_s23 }
 0x356   :  { %s826_s24 = scalar_lea.vmem %s608_s23, 128  ;;  %p831_p9 = scmp.lt.s32.totalorder %s608_s23, %s608_s23 }
 0x357   :  { %p827_p8 = scmp.ne.s32.totalorder %s608_s23, %s826_s24  ;;  %p832_p10 = scmp.lt.s32.totalorder %s826_s24, %s826_s24 }
 0x359   :  { %p833_p11 = por %p832_p10, %p831_p9 }
 0x35b   :  { %p834_p12 = pnand %p833_p11, %p827_p8 }
 0x41e   :  { %v567_v14 = vpop.f32.mrb[4].mxu1 }
 0x41f   :  { %v568_v8 = vadd.f32 %v636_v10, %v567_v14  ;;  %v738_v13 = vpop.f32.mrb[5].mxu1 }
 0x420   :  { %v570_v16 = vpop.f32.mrb[6].mxu1 }
 0x421   :  { %590 = vst [vmem:[#allocation4] sm:$0xff] %v568_v8  ;;  %v739_v15 = vpop.f32.mrb[7].mxu1 }
 0x422   :  { %837 = shalt.err (!%p834_p12)
}
 0x423   :  { %s838_s3 = scalar_lea.hbm %s1100_s6, 128 }
 0x424   :  { %p839_p13 = scmp.ne.s32.totalorder %s1100_s6, %s838_s3  ;;  %p842_p0 = scmp.lt.u32.totalorder %s838_s3, %s1100_s6 }
 0x426   :  { %p844_p1 = pnand %p842_p0, %p839_p13 }
 0x428   :  { %847 = shalt.err (!%p844_p1)
}
 0x429   :  { %610 = dma.vmem_to_hbm [thread:$0]  %s608_s23, 128, %s1100_s6, [#allocation5]  }
 0x42a   :  { %848 = dma.done.wait [#allocation3], 128  }
 0x42b   :  { %849 = vsyncadd [#allocation3], 4294967168 }
 0x42c   :  { %850 = dma.done.wait [#allocation5], 128  }
 0x42d   :  { %851 = vsyncadd [#allocation5], 4294967168 }
 0x42e   :  { %617 = vsyncpa [#allocation3], 1 }
 0x42f   :  { %618 = vsyncpa [#allocation5], 1 }

</bundles_post_ra>
